<compile_context>
chip_gen: v7x
topology: tpu7x:2x2x1
jax: 0.10.0
libtpu: 0.0.40
codegen_flags: <defaults>
</compile_context>

<pallas_src>
import functools

import jax
import jax.numpy as jnp
from jax.experimental import pallas as pl
from jax.experimental.pallas import tpu as pltpu


# ---------------------------------------------------------------------------
# Kernel body
# ---------------------------------------------------------------------------
def _silu_kernel(x_ref, o_ref, *, compute_dtype):
    x = x_ref[...].astype(compute_dtype)
    # sigmoid(x) = 0.5 * (tanh(x/2) + 1): one EUP push per element; the
    # multiply/adds ride the VPU.  Exact math, so f32 matches jax.nn.sigmoid
    # to rounding error.
    sig = 0.5 * (jnp.tanh(0.5 * x) + 1.0)
    o_ref[...] = (x * sig).astype(o_ref.dtype)


# ---------------------------------------------------------------------------
# Layout / tiling helpers (pure Python, static shapes)
# ---------------------------------------------------------------------------
_LANE_WIDTHS = (2048, 1024, 512, 256, 128)


def _cdiv(a, b):
    return -(-a // b)


def _round_up(a, m):
    return ((a + m - 1) // m) * m


def _lane_dense_layout(n):
    """Pick a lane-dense slab width W (multiple of 128) and a pad amount.

    Prefers no padding; otherwise pads the flattened array by <=127 elements
    so every vreg lane is used and stores are unmasked full-width vst.
    """
    for w in _LANE_WIDTHS:
        if n % w == 0:
            return w, 0
    n_pad = _round_up(n, 128)
    pad = n_pad - n
    for w in _LANE_WIDTHS:
        if n_pad % w == 0:
            return w, pad
    return 128, pad  # unreachable: n_pad is a multiple of 128


def _target_tile_bytes():
    """~4 MiB tiles by default; ~8 MiB on v7x (64 MiB VMEM, 3.2 TB/s HBM)."""
    try:
        info = pltpu.get_tpu_info()
        vmem_cap = getattr(info, "vmem_capacity_bytes", None)
    except Exception:  # no TPU info available -> conservative default
        vmem_cap = None
    if vmem_cap is not None and vmem_cap <= 64 * 1024 * 1024:
        return 8 * 1024 * 1024   # v7x-class: amortize per-step overhead harder
    return 4 * 1024 * 1024       # v5e / v6e


# ---------------------------------------------------------------------------
# Public wrapper
# ---------------------------------------------------------------------------
def silu(x):
    """Elementwise SiLU. Accepts any rank / any float dtype."""
    orig_shape = x.shape
    orig_dtype = x.dtype
    n = x.size
    if n == 0:
        return x

    # bf16 computes natively (v6e/v7x have bf16 VPU/EUP); everything else f32.
    if jnp.dtype(orig_dtype) in (jnp.dtype(jnp.bfloat16), jnp.dtype(jnp.float32)):
        compute_dtype = orig_dtype
    else:
        compute_dtype = jnp.float32

    # Lane-dense slab: (R, W) with W a multiple of 128 equal to the block
    # width, so every grid step DMAs one fully contiguous HBM run.
    W, pad = _lane_dense_layout(n)
    flat = x.reshape(-1)
    if pad:
        flat = jnp.pad(flat, (0, pad))
    R = (n + pad) // W
    x2 = flat.reshape(R, W)

    itemsize = jnp.dtype(orig_dtype).itemsize
    tile_bytes = _target_tile_bytes()
    block_rows = max(8, (tile_bytes // (W * itemsize)) // 8 * 8)
    tr = min(block_rows, R)  # multiple of 8, or the full (ragged) row extent

    # v7x has 2 TensorCores sharded across the parallel grid axis: make sure
    # both get a block when there's enough data, and bias to an even count.
    steps = _cdiv(R, tr)
    if steps == 1 and R >= 16:
        tr = min(tr, _round_up(_cdiv(R, 2), 8))
        steps = _cdiv(R, tr)
    elif steps > 1 and steps % 2 == 1:
        tr_even = _round_up(_cdiv(R, steps + 1), 8)
        if 8 <= tr_even <= R:
            tr = tr_even
            steps = _cdiv(R, tr)

    # VMEM budget from the actual footprint: 2 refs x 2 pipeline buffers per
    # tile, plus slack for compiler scratch; clamped under v7x's 64 MiB.
    tile_vmem = tr * W * itemsize
    vmem_limit = min(max(2 * 2 * tile_vmem + (4 << 20), 16 << 20), 48 << 20)

    kernel = functools.partial(_silu_kernel, compute_dtype=compute_dtype)

    out = pl.pallas_call(
        kernel,
        out_shape=jax.ShapeDtypeStruct((R, W), orig_dtype),
        grid_spec=pltpu.PrefetchScalarGridSpec(
            num_scalar_prefetch=0,
            grid=(steps,),
            in_specs=[pl.BlockSpec((tr, W), lambda i: (i, 0))],
            out_specs=pl.BlockSpec((tr, W), lambda i: (i, 0)),
        ),
        compiler_params=pltpu.CompilerParams(
            dimension_semantics=("parallel",),
            vmem_limit_bytes=vmem_limit,
        ),
    )(x2)

    if pad:
        return out.reshape(-1)[:n].reshape(orig_shape)
    return out.reshape(orig_shape)


# ---------------------------------------------------------------------------
# Self-test
# ---------------------------------------------------------------------------
if __name__ == "__main__":
    key = jax.random.PRNGKey(0)

    # Transformer-style activation: (batch=2, seq=8, hidden=32), f32.
    x = jax.random.normal(key, (2, 8, 32), dtype=jnp.float32)
    y = jax.block_until_ready(silu(x))
    y_ref = x * jax.nn.sigmoid(x)
    assert y.shape == x.shape and y.dtype == x.dtype
    assert jnp.allclose(y, y_ref, atol=1e-5, rtol=1e-5)

    # Ragged / bf16 path (exercises pad-to-128 fallback + bf16-native compute).
    xb = jax.random.normal(jax.random.PRNGKey(1), (3, 7, 5), dtype=jnp.bfloat16)
    yb = jax.block_until_ready(silu(xb))
    xb_f32 = xb.astype(jnp.float32)
    yb_ref = xb_f32 * jax.nn.sigmoid(xb_f32)
    assert yb.shape == xb.shape and yb.dtype == xb.dtype
    assert jnp.allclose(yb.astype(jnp.float32), yb_ref, atol=2e-2, rtol=2e-2)

    # Multi-step (>=2 parallel grid steps) path.
    xg = jax.random.normal(jax.random.PRNGKey(2), (16, 2048), dtype=jnp.float32)
    yg = jax.block_until_ready(silu(xg))
    yg_ref = xg * jax.nn.sigmoid(xg)
    assert yg.shape == xg.shape and yg.dtype == xg.dtype
    assert jnp.allclose(yg, yg_ref, atol=1e-5, rtol=1e-5)

    print("KERNEL_OK")
</pallas_src>

<mosaic_0001>
module attributes {stable_mosaic.version = 11 : i64} {
  func.func @_silu_kernel(%arg0: i32, %arg1: memref<1x512xf32, #tpu.memory_space<vmem>>, %arg2: memref<1x512xf32, #tpu.memory_space<vmem>>) attributes {dimension_semantics = [#tpu.dimension_semantics<parallel>], iteration_bounds = array<i64: 1>, scalar_prefetch = 0 : i64, scratch_operands = 0 : i64, tpu.core_type = #tpu.core_type<tc>, window_params = [{transform_indices = @transform_0, window_bounds = array<i64: 1, 512>}, {transform_indices = @transform_1, window_bounds = array<i64: 1, 512>}]} {
    %c0 = arith.constant 0 : index
    %c0_0 = arith.constant 0 : index
    %0 = vector.load %arg1[%c0, %c0_0] : memref<1x512xf32, #tpu.memory_space<vmem>>, vector<1x512xf32>
    %cst = arith.constant 5.000000e-01 : f32
    %1 = vector.broadcast %cst : f32 to vector<1x512xf32>
    %2 = arith.mulf %1, %0 : vector<1x512xf32>
    %3 = math.tanh %2 : vector<1x512xf32>
    %cst_1 = arith.constant 1.000000e+00 : f32
    %4 = vector.broadcast %cst_1 : f32 to vector<1x512xf32>
    %5 = arith.addf %3, %4 : vector<1x512xf32>
    %cst_2 = arith.constant 5.000000e-01 : f32
    %6 = vector.broadcast %cst_2 : f32 to vector<1x512xf32>
    %7 = arith.mulf %6, %5 : vector<1x512xf32>
    %8 = arith.mulf %0, %7 : vector<1x512xf32>
    %c0_3 = arith.constant 0 : index
    %c0_4 = arith.constant 0 : index
    %9 = vector.load %arg2[%c0_3, %c0_4] : memref<1x512xf32, #tpu.memory_space<vmem>>, vector<1x512xf32>
    tpu.vector_store %arg2[%c0_3, %c0_4], %8 {strides = array<i32>} : memref<1x512xf32, #tpu.memory_space<vmem>>, vector<1x512xf32>,
    return
  }
  func.func @transform_0(%arg0: i32) -> (i32, i32) {
    %c0_i32 = arith.constant 0 : i32
    %c0_i32_0 = arith.constant 0 : i32
    return %arg0, %c0_i32 : i32, i32
  }
  func.func @transform_1(%arg0: i32) -> (i32, i32) {
    %c0_i32 = arith.constant 0 : i32
    %c0_i32_0 = arith.constant 0 : i32
    return %arg0, %c0_i32 : i32, i32
  }
}

</mosaic_0001>

<bundles_post_ra>
// kernel: tpu_custom_call.1
= control target key start
LH: loop header
LB: loop body
LE: loop exit
PB: predicated region body
PF: predicated region fallthrough
CT: control target
= control target key end

     0   :  { %6 = vsyncpa [#allocation3], 0  ;;  %s135_s0 = inlined_call_operand.hbm [shape: f32[1,512], index: 0, kind: input, shape index: {}]   ;;  %s136_s1 = inlined_call_operand.hbm [shape: f32[1,512], index: 1, kind: output, shape index: {}]  }
   0x1   :  { %7 = vsyncpa [#allocation4], 0  ;;  %s99_s6 = smov [#allocation2]   ;;  %s51_s10 = scalar_lea.hbm %s135_s0, 64 }
   0x2   :  { %s14_s7 = sshll.u32 %s99_s6, 4  ;;  %p52_p0 = scmp.ne.s32.totalorder %s135_s0, %s51_s10  ;;  %s15_s7 = int_to_ptr.vmem [resolvable:$true] %s14_s7 }
   0x3   :  { %p55_p1 = scmp.lt.u32.totalorder %s51_s10, %s135_s0 }
   0x5   :  { %p57_p2 = pnand %p55_p1, %p52_p0 }
   0x7   :  { %60 = shalt.err (!%p57_p2)
}
   0x8   :  { %s61_s15 = scalar_lea.vmem %s15_s7, 64  ;;  %p66_p4 = scmp.lt.s32.totalorder %s15_s7, %s15_s7 }
   0x9   :  { %p62_p3 = scmp.ne.s32.totalorder %s15_s7, %s61_s15  ;;  %p67_p5 = scmp.lt.s32.totalorder %s61_s15, %s61_s15 }
   0xb   :  { %p68_p6 = por %p67_p5, %p66_p4 }
   0xd   :  { %p69_p7 = pnand %p68_p6, %p62_p3 }
   0xf   :  { %72 = shalt.err (!%p69_p7)
}
  0x10   :  { %17 = dma.hbm_to_vmem [thread:$0]  %s135_s0, 64, %s15_s7, [#allocation3]  }
  0x11   :  { %95 = dma.done.wait [#allocation3], 64  }
  0x12   :  { %96 = vsyncadd [#allocation3], 4294967232  ;;  %v21_v0 = vld [vmem:[#allocation2] sm:$0xf]  ;;  %v27_v3 = vlaneseq  ;;  %s100_s18 = smov [#allocation5]  }
  0x13   :  { %v22_v1 = vmul.f32 0.5, %v21_v0  ;;  %s38_s19 = sshll.u32 %s100_s18, 4  ;;  %s39_s19 = int_to_ptr.vmem [resolvable:$true] %s38_s19 }
  0x14   :  { %vm29_vm0 = vcmp.lt.s32.totalorder %v27_v3, 512  ;;  %s73_s20 = scalar_lea.vmem %s39_s19, 64  ;;  %p78_p9 = scmp.lt.s32.totalorder %s39_s19, %s39_s19 }
  0x15   :  { %49 = vtanh.f32 %v22_v1  ;;  %p74_p8 = scmp.ne.s32.totalorder %s39_s19, %s73_s20  ;;  %p79_p10 = scmp.lt.s32.totalorder %s73_s20, %s73_s20 }
  0x17   :  { %p80_p11 = por %p79_p10, %p78_p9 }
  0x19   :  { %p81_p12 = pnand %p80_p11, %p74_p8 }
  0x1f   :  { %v50_v2 = vpop.eup %49 }
  0x20   :  { %v24_v4 = vadd.f32 1.0, %v50_v2 }
  0x22   :  { %v25_v5 = vmul.f32 0.5, %v24_v4 }
  0x24   :  { %v26_v6 = vmul.f32 %v25_v5, %v21_v0 }
  0x26   :  { %31 = vst.msk [vmem:[#allocation5] sm:$0xf] %vm29_vm0, %v26_v6 }
  0x27   :  { %84 = shalt.err (!%p81_p12)
}
  0x28   :  { %s85_s22 = scalar_lea.hbm %s136_s1, 64 }
  0x29   :  { %p86_p13 = scmp.ne.s32.totalorder %s136_s1, %s85_s22  ;;  %p89_p0 = scmp.lt.u32.totalorder %s85_s22, %s136_s1 }
  0x2b   :  { %p91_p1 = pnand %p89_p0, %p86_p13 }
  0x2d   :  { %94 = shalt.err (!%p91_p1)
}
  0x2e   :  { %41 = dma.vmem_to_hbm [thread:$0]  %s39_s19, 64, %s136_s1, [#allocation4]  }
  0x2f   :  { %97 = dma.done.wait [#allocation4], 64  }
  0x30   :  { %98 = vsyncadd [#allocation4], 4294967232 }
  0x31   :  { %45 = vsyncpa [#allocation3], 1 }
  0x32   :  { %46 = vsyncpa [#allocation4], 1 }

</bundles_post_ra>
